<compile_context>
chip_gen: v7x
topology: tpu7x:2x2x1
jax: 0.10.0
libtpu: 0.0.40
codegen_flags: <defaults>
</compile_context>

<pallas_src>
import functools
import math

import numpy as np
import jax
import jax.numpy as jnp
from jax.experimental import pallas as pl
from jax.experimental.pallas import tpu as pltpu


def _round_up(x, m):
    return (x + m - 1) // m * m


# --------------------------- tiled linear: y = x @ W (+ b) ---------------------------

def _linear_bias_kernel(x_ref, w_ref, b_ref, o_ref):
    # MXU matmul on bf16 operands with f32 accumulation; bias add stays in f32.
    acc = jnp.dot(x_ref[...], w_ref[...], preferred_element_type=jnp.float32)
    o_ref[...] = (acc + b_ref[...]).astype(o_ref.dtype)


def _linear_nobias_kernel(x_ref, w_ref, o_ref):
    acc = jnp.dot(x_ref[...], w_ref[...], preferred_element_type=jnp.float32)
    o_ref[...] = acc.astype(o_ref.dtype)


def linear(x2, w, b=None, *, tm=256, compute_dtype=jnp.bfloat16, out_dtype=None,
           vmem_budget=40 << 20):
    """x2: [M, Cin], w: [Cin, Cout], b: [Cout] or None -> [M, Cout] (out_dtype)."""
    M, Cin = x2.shape
    Cout = w.shape[1]
    out_dtype = out_dtype or x2.dtype

    in_itm = np.dtype(compute_dtype).itemsize
    out_itm = np.dtype(out_dtype).itemsize

    # Big row tiles feed the MXU and amortize per-grid-step overhead; the output stays
    # full-width (lane-dense, unmasked stores).  Shrink tm until the double-buffered
    # working set fits a budget that is safe on v5e / v6e / v7x.
    tm = min(tm, _round_up(M, 8))

    def _need(t):
        return (2 * t * Cin * in_itm                      # x tile (2 bufs)
                + 2 * Cin * Cout * in_itm                 # resident weight (2 bufs)
                + (2 * Cout * 4 if b is not None else 0)  # bias
                + 2 * t * Cout * out_itm)                 # out tile (2 bufs)

    while tm > 8 and _need(tm) > vmem_budget:
        tm = max(8, tm // 2)
    # TODO(synk): for very large Cin*Cout the resident weight alone can exceed the
    #             budget (v5e/v7x); tile Cout (multiple of 256) on an outer grid axis.

    Mp = _round_up(M, tm)
    if Mp != M:
        x2 = jnp.pad(x2, ((0, Mp - M), (0, 0)))

    xc = x2.astype(compute_dtype)
    wc = w.astype(compute_dtype)

    vmem_limit = int(min(max(_need(tm) + (4 << 20), 32 << 20), 56 << 20))

    x_spec = pl.BlockSpec((tm, Cin), lambda i: (i, 0))        # row tile of x
    w_spec = pl.BlockSpec((Cin, Cout), lambda i: (0, 0))      # resident weight
    o_spec = pl.BlockSpec((tm, Cout), lambda i: (i, 0))       # full-width, lane-dense

    flops = 2 * Mp * Cin * Cout
    bytes_accessed = (Mp * Cin * in_itm + Cin * Cout * in_itm
                      + (Cout * 4 if b is not None else 0) + Mp * Cout * out_itm)

    if b is not None:
        b2 = b.astype(jnp.float32).reshape(1, Cout)
        kernel = _linear_bias_kernel
        in_specs = [x_spec, w_spec, pl.BlockSpec((1, Cout), lambda i: (0, 0))]
        args = (xc, wc, b2)
    else:
        kernel = _linear_nobias_kernel
        in_specs = [x_spec, w_spec]
        args = (xc, wc)

    out = pl.pallas_call(
        kernel,
        out_shape=jax.ShapeDtypeStruct((Mp, Cout), out_dtype),
        grid_spec=pltpu.PrefetchScalarGridSpec(
            num_scalar_prefetch=0,
            grid=(Mp // tm,),
            in_specs=in_specs,
            out_specs=o_spec,
        ),
        compiler_params=pltpu.CompilerParams(
            dimension_semantics=("parallel",),
            vmem_limit_bytes=vmem_limit),
        cost_estimate=pl.CostEstimate(
            flops=flops, transcendentals=0, bytes_accessed=bytes_accessed),
    )(*args)

    return out[:M] if Mp != M else out


# ----------------- attention core: all heads of one batch element per step -----------------

def _attention_kernel(qkv_ref, o_ref, *, num_heads, head_dim, scale):
    # qkv_ref: (N, 3C) packed as [q | k | v], each C = num_heads*head_dim wide with the
    # head-h slice at columns [h*dh:(h+1)*dh].  o_ref: (N, C) head-merged output block.
    C = num_heads * head_dim
    for h in range(num_heads):                      # static unroll over heads
        lo = h * head_dim
        hi = lo + head_dim
        q = qkv_ref[:, lo:hi]                       # (N, dh) bf16
        k = qkv_ref[:, C + lo:C + hi]
        v = qkv_ref[:, 2 * C + lo:2 * C + hi]
        # Q @ K^T without materializing a transpose of K (contract last dims on MXU).
        s = jax.lax.dot_general(q, k, (((1,), (1,)), ((), ())),
                                preferred_element_type=jnp.float32) * scale   # (N, N)
        # numerically-stable softmax (matches `attn - max` then softmax in the module)
        s = s - jnp.max(s, axis=-1, keepdims=True)
        p = jnp.exp(s)
        p = p / jnp.sum(p, axis=-1, keepdims=True)
        # attn_drop(p=0.0) is identity
        o = jnp.dot(p.astype(v.dtype), v, preferred_element_type=jnp.float32)  # (N, dh)
        o_ref[:, lo:hi] = o.astype(o_ref.dtype)


def attention_core(qkv_bn3c, scale, *, num_heads, out_dtype=jnp.bfloat16):
    """qkv_bn3c: [B, N, 3C] packed qkv -> [B, N, C] head-merged attention output."""
    B, N, C3 = qkv_bn3c.shape
    C = C3 // 3
    dh = C // num_heads

    in_itm = np.dtype(qkv_bn3c.dtype).itemsize
    out_itm = np.dtype(out_dtype).itemsize
    # Per-step working set: double-buffered (N,3C) input + (N,C) output blocks plus a
    # few (N,N) f32 score/softmax temporaries.
    need = 2 * N * C3 * in_itm + 2 * N * C * out_itm + 6 * N * N * 4
    if need > (48 << 20):
        # TODO(synk): flash-style KV tiling (online softmax m/l/acc scratch) for long
        #             sequences; the un-tiled NxN softmax would VMEM-OOM (esp. v7x).
        raise ValueError(
            f"attention working set {need} bytes exceeds the VMEM budget; "
            "sequence length too large for the un-tiled softmax kernel")
    vmem_limit = int(min(max(need + (4 << 20), 32 << 20), 56 << 20))

    qkv_spec = pl.BlockSpec((None, N, C3), lambda b: (b, 0, 0))
    out_spec = pl.BlockSpec((None, N, C), lambda b: (b, 0, 0))

    return pl.pallas_call(
        functools.partial(_attention_kernel, num_heads=num_heads, head_dim=dh,
                          scale=scale),
        out_shape=jax.ShapeDtypeStruct((B, N, C), out_dtype),
        grid_spec=pltpu.PrefetchScalarGridSpec(
            num_scalar_prefetch=0,
            grid=(B,),                    # parallel -> shards across v7x's 2 TensorCores
            in_specs=[qkv_spec],
            out_specs=out_spec,
        ),
        compiler_params=pltpu.CompilerParams(
            dimension_semantics=("parallel",),
            vmem_limit_bytes=vmem_limit),
        cost_estimate=pl.CostEstimate(
            flops=4 * B * num_heads * N * N * dh,
            transcendentals=B * num_heads * N * N,
            bytes_accessed=B * N * C3 * in_itm + B * N * C * out_itm),
    )(qkv_bn3c)


# ------------------------------------ full forward ------------------------------------

def attention_forward(x, wqkv, bqkv, wproj, bproj, *, num_heads, qk_scale=None,
                      compute_dtype=jnp.bfloat16):
    """x: [B, N, C]; wqkv: [C, 3C]; bqkv: [3C] or None; wproj: [C, C]; bproj: [C]."""
    B, N, C = x.shape
    dh = C // num_heads
    scale = qk_scale if qk_scale is not None else dh ** (-0.5)
    M = B * N

    x2 = x.reshape(M, C)

    # qkv projection -> bf16 intermediate (consumer is a bf16 MXU matmul anyway).
    qkv = linear(x2, wqkv, bqkv, compute_dtype=compute_dtype,
                 out_dtype=compute_dtype)                      # [M, 3C] bf16
    # No head split/merge transposes: reshape to [B, N, 3C] is free (contiguous) and the
    # attention kernel slices per-head columns and writes the merged layout directly.
    qkv = qkv.reshape(B, N, 3 * C)

    o = attention_core(qkv, scale, num_heads=num_heads,
                       out_dtype=compute_dtype)                # [B, N, C] bf16, merged

    y = linear(o.reshape(M, C), wproj, bproj, compute_dtype=compute_dtype,
               out_dtype=x.dtype)                              # [M, C]
    return y.reshape(B, N, C)


# ------------------------------------ params / reference ------------------------------------

def init_attention_params(key, dim, num_heads, qkv_bias=False, dtype=jnp.float32):
    """Deterministic init mimicking nn.Linear defaults; weights stored [in, out]."""
    kqw, kqb, kpw, kpb = jax.random.split(key, 4)
    bound = 1.0 / math.sqrt(dim)
    wqkv = jax.random.uniform(kqw, (dim, 3 * dim), dtype, -bound, bound)
    bqkv = (jax.random.uniform(kqb, (3 * dim,), dtype, -bound, bound)
            if qkv_bias else None)
    wproj = jax.random.uniform(kpw, (dim, dim), dtype, -bound, bound)
    bproj = jax.random.uniform(kpb, (dim,), dtype, -bound, bound)
    return wqkv, bqkv, wproj, bproj


def attention_reference(x, wqkv, bqkv, wproj, bproj, *, num_heads, qk_scale=None):
    B, N, C = x.shape
    H = num_heads
    dh = C // H
    scale = qk_scale if qk_scale is not None else dh ** (-0.5)
    qkv = jnp.dot(x, wqkv)
    if bqkv is not None:
        qkv = qkv + bqkv
    qkv = qkv.reshape(B, N, 3, H, dh).transpose(2, 0, 3, 1, 4)
    q, k, v = qkv[0], qkv[1], qkv[2]
    attn = jnp.einsum('bhnd,bhmd->bhnm', q, k) * scale
    attn = jax.nn.softmax(attn - jnp.max(attn, axis=-1, keepdims=True), axis=-1)
    o = jnp.einsum('bhnm,bhmd->bhnd', attn, v)
    o = o.transpose(0, 2, 1, 3).reshape(B, N, C)
    return jnp.dot(o, wproj) + bproj


if __name__ == "__main__":
    # Small ViT-like shapes: batch=2, tokens=16, dim=64, heads=4 (head_dim=16)
    B, N, C, H = 2, 16, 64, 4
    key = jax.random.PRNGKey(0)
    kx, kp = jax.random.split(key)
    x = jax.random.normal(kx, (B, N, C), jnp.float32)
    wqkv, bqkv, wproj, bproj = init_attention_params(kp, C, H, qkv_bias=False)

    y = attention_forward(x, wqkv, bqkv, wproj, bproj, num_heads=H)
    y = jax.block_until_ready(y)

    y_ref = attention_reference(x, wqkv, bqkv, wproj, bproj, num_heads=H)
    assert y.shape == (B, N, C)
    max_err = float(jnp.max(jnp.abs(y - y_ref)))
    # bf16 matmul operands / bf16 intermediates with f32 accumulation vs f32 reference.
    assert jnp.allclose(y, y_ref, atol=3e-2, rtol=3e-2), \
        f"mismatch vs reference (max abs err={max_err})"
    print("KERNEL_OK")
</pallas_src>

<mosaic_0001>
module attributes {stable_mosaic.version = 11 : i64} {
  func.func @_linear_nobias_kernel(%arg0: i32, %arg1: memref<32x64xbf16, #tpu.memory_space<vmem>>, %arg2: memref<64x192xbf16, #tpu.memory_space<vmem>>, %arg3: memref<32x192xbf16, #tpu.memory_space<vmem>>) attributes {dimension_semantics = [#tpu.dimension_semantics<parallel>], iteration_bounds = array<i64: 1>, scalar_prefetch = 0 : i64, scratch_operands = 0 : i64, tpu.core_type = #tpu.core_type<tc>, window_params = [{transform_indices = @transform_0, window_bounds = array<i64: 32, 64>}, {pipeline_mode = #tpu.pipeline_mode<synchronous>, transform_indices = @transform_1, window_bounds = array<i64: 64, 192>}, {transform_indices = @transform_2, window_bounds = array<i64: 32, 192>}]} {
    %c0 = arith.constant 0 : index
    %c0_0 = arith.constant 0 : index
    %0 = vector.load %arg1[%c0, %c0_0] : memref<32x64xbf16, #tpu.memory_space<vmem>>, vector<32x64xbf16>
    %c0_1 = arith.constant 0 : index
    %c0_2 = arith.constant 0 : index
    %1 = vector.load %arg2[%c0_1, %c0_2] : memref<64x192xbf16, #tpu.memory_space<vmem>>, vector<64x192xbf16>
    %cst = arith.constant dense<0.000000e+00> : vector<32x192xf32>
    %2 = tpu.matmul %0, %1, %cst {dimension_numbers = #tpu.dot_dimension_numbers<[1], [0], [0], [1], [0, 0, 1, 1], [], []>} : vector<32x64xbf16>, vector<64x192xbf16>, vector<32x192xf32> -> vector<32x192xf32>
    %3 = arith.truncf %2 : vector<32x192xf32> to vector<32x192xbf16>
    %c0_3 = arith.constant 0 : index
    %c0_4 = arith.constant 0 : index
    %4 = vector.load %arg3[%c0_3, %c0_4] : memref<32x192xbf16, #tpu.memory_space<vmem>>, vector<32x192xbf16>
    tpu.vector_store %arg3[%c0_3, %c0_4], %3 {strides = array<i32>} : memref<32x192xbf16, #tpu.memory_space<vmem>>, vector<32x192xbf16>,
    return
  }
  func.func @transform_0(%arg0: i32) -> (i32, i32) {
    %c0_i32 = arith.constant 0 : i32
    %c0_i32_0 = arith.constant 0 : i32
    return %arg0, %c0_i32 : i32, i32
  }
  func.func @transform_1(%arg0: i32) -> (i32, i32) {
    %c0_i32 = arith.constant 0 : i32
    %c0_i32_0 = arith.constant 0 : i32
    %c0_i32_1 = arith.constant 0 : i32
    return %c0_i32, %c0_i32_0 : i32, i32
  }
  func.func @transform_2(%arg0: i32) -> (i32, i32) {
    %c0_i32 = arith.constant 0 : i32
    %c0_i32_0 = arith.constant 0 : i32
    return %arg0, %c0_i32 : i32, i32
  }
}

</mosaic_0001>

<bundles_post_ra>
// kernel: tpu_custom_call.1
= control target key start
LH: loop header
LB: loop body
LE: loop exit
PB: predicated region body
PF: predicated region fallthrough
CT: control target
= control target key end

     0   :  { %7 = vsyncpa [#allocation3], 0  ;;  %s411_s0 = inlined_call_operand.hbm [shape: bf16[32,64], index: 0, kind: input, shape index: {}]   ;;  %s412_s1 = inlined_call_operand.hbm [shape: bf16[64,192], index: 1, kind: input, shape index: {}]   ;;  %s413_s2 = inlined_call_operand.hbm [shape: bf16[32,192], index: 2, kind: output, shape index: {}]  }
   0x1   :  { %8 = vsyncpa [#allocation6], 0 }
   0x2   :  { %9 = vsyncpa [#allocation4], 0  ;;  %s334_s9 = smov [#allocation2]   ;;  %s262_s13 = scalar_lea.hbm %s411_s0, 256 }
   0x3   :  { %s15_s10 = sshll.u32 %s334_s9, 4  ;;  %p263_p0 = scmp.ne.s32.totalorder %s411_s0, %s262_s13  ;;  %s16_s10 = int_to_ptr.vmem [resolvable:$true] %s15_s10 }
   0x4   :  { %p266_p1 = scmp.lt.u32.totalorder %s262_s13, %s411_s0 }
   0x6   :  { %p268_p2 = pnand %p266_p1, %p263_p0 }
   0x8   :  { %271 = shalt.err (!%p268_p2)
}
   0x9   :  { %s272_s18 = scalar_lea.vmem %s16_s10, 256  ;;  %p277_p4 = scmp.lt.s32.totalorder %s16_s10, %s16_s10 }
   0xa   :  { %p273_p3 = scmp.ne.s32.totalorder %s16_s10, %s272_s18  ;;  %p278_p5 = scmp.lt.s32.totalorder %s272_s18, %s272_s18 }
   0xc   :  { %p279_p6 = por %p278_p5, %p277_p4 }
   0xe   :  { %p280_p7 = pnand %p279_p6, %p273_p3 }
  0x10   :  { %283 = shalt.err (!%p280_p7)
}
  0x11   :  { %s335_s19 = smov 64   ;;  %s336_s20 = smov 4  }
  0x12   :  { %21 = dma.hbm_to_vmem [thread:$0]  %s411_s0, 256, %s16_s10, [#allocation3], %s335_s19, %s335_s19, %s336_s20  }
  0x13   :  { %s337_s23 = smov [#allocation5]   ;;  %s284_s27 = scalar_lea.hbm %s412_s1, 1024 }
  0x14   :  { %s27_s24 = sshll.u32 %s337_s23, 4  ;;  %p285_p8 = scmp.ne.s32.totalorder %s412_s1, %s284_s27  ;;  %s28_s24 = int_to_ptr.vmem [resolvable:$true] %s27_s24 }
  0x15   :  { %p288_p9 = scmp.lt.u32.totalorder %s284_s27, %s412_s1 }
  0x17   :  { %p290_p10 = pnand %p288_p9, %p285_p8 }
  0x19   :  { %293 = shalt.err (!%p290_p10)
}
  0x1a   :  { %s294_s4 = scalar_lea.vmem %s28_s24, 1024  ;;  %p299_p12 = scmp.lt.s32.totalorder %s28_s24, %s28_s24 }
  0x1b   :  { %p295_p11 = scmp.ne.s32.totalorder %s28_s24, %s294_s4  ;;  %p300_p13 = scmp.lt.s32.totalorder %s294_s4, %s294_s4 }
  0x1d   :  { %p301_p0 = por %p300_p13, %p299_p12 }
  0x1f   :  { %p302_p1 = pnand %p301_p0, %p295_p11 }
  0x21   :  { %305 = shalt.err (!%p302_p1)
}
  0x22   :  { %s338_s0 = smov 128   ;;  %s339_s5 = smov 8  }
  0x23   :  { %33 = dma.hbm_to_vmem [thread:$0]  %s412_s1, 1024, %s28_s24, [#allocation6], %s338_s0, %s338_s0, %s339_s5  }
  0x24   :  { %328 = dma.done.wait [#allocation3], 256  }
  0x25   :  { %329 = vsyncadd [#allocation3], 4294967040 }
  0x26   :  { %330 = dma.done.wait [#allocation6], 1024  }
  0x27   :  { %331 = vsyncadd [#allocation6], 4294966272  ;;  %v340_v0 = vmov 0   ;;  %v248_v1 = vld [vmem:[#allocation5 + $0x4] ss:$8 sps:$4 sm:$0xff]   ;;  %v260_v9 = vld [vmem:[#allocation2] sm:$0xff]  }
  0x28   :  { %142 = vmatprep.mubr.bf16.mxu0 %v340_v0  ;;  %152 = vmatprep.mubr.bf16.mxu1 %v340_v0  ;;  %v250_v2 = vld [vmem:[#allocation5] ss:$8 sps:$4 sm:$0xff]   ;;  %v251_v3 = vld [vmem:[#allocation5 + $0x14] ss:$8 sps:$4 sm:$0xff]   ;;  %v253_v4 = vld [vmem:[#allocation5 + $0x10] ss:$8 sps:$4 sm:$0xff]  }
  0x29   :  { %110 = vmatprep.subr.bf16.mxu0 %v248_v1  ;;  %232 = vmatprep.subr.bf16.mxu1 %v248_v1  ;;  %v254_v5 = vld [vmem:[#allocation5 + $0x24] ss:$8 sps:$4 sm:$0xff]   ;;  %v256_v6 = vld [vmem:[#allocation5 + $0x20] ss:$8 sps:$4 sm:$0xff]   ;;  %v257_v7 = vld [vmem:[#allocation5 + $0x34] ss:$8 sps:$4 sm:$0xff]  }
  0x2a   :  { %111 = vmatpush1.bf16.msra.mxu0 %v250_v2  ;;  %236 = vmatpush1.bf16.msra.mxu1 %v250_v2  ;;  %v259_v8 = vld [vmem:[#allocation5 + $0x30] ss:$8 sps:$4 sm:$0xff]   ;;  %vm103_vm0 = vcmask 523264   ;;  %vm187_vm1 = vcmask 1043456   ;;  %vm188_vm2 = vcmask 523268   ;;  %s341_s1 = smov [#allocation7]  }
  0x2b   :  { %112 = vmatprep.subr.bf16.mxu0 %v251_v3  ;;  %233 = vmatprep.subr.bf16.mxu1 %v251_v3  ;;  %v261_v10 = vld [vmem:[#allocation2 + $0x8] sm:$0xff]   ;;  %vm384_vm3 = vmor %vm188_vm2, %vm187_vm1  ;;  %s199_s8 = sshll.u32 %s341_s1, 4  ;;  %s200_s8 = int_to_ptr.vmem [resolvable:$true] %s199_s8 }
  0x2c   :  { %s306_s9 = scalar_lea.vmem %s200_s8, 512  ;;  %p311_p3 = scmp.lt.s32.totalorder %s200_s8, %s200_s8 }
  0x2d   :  { %p307_p2 = scmp.ne.s32.totalorder %s200_s8, %s306_s9  ;;  %p312_p4 = scmp.lt.s32.totalorder %s306_s9, %s306_s9 }
  0x2e   :  { %113 = vmatpush1.bf16.msra.mxu0 %v253_v4  ;;  %237 = vmatpush1.bf16.msra.mxu1 %v253_v4 }
  0x2f   :  { %114 = vmatprep.subr.bf16.mxu0 %v254_v5  ;;  %234 = vmatprep.subr.bf16.mxu1 %v254_v5  ;;  %p313_p5 = por %p312_p4, %p311_p3 }
  0x31   :  { %p314_p6 = pnand %p313_p5, %p307_p2 }
  0x32   :  { %115 = vmatpush1.bf16.msra.mxu0 %v256_v6  ;;  %238 = vmatpush1.bf16.msra.mxu1 %v256_v6 }
  0x33   :  { %116 = vmatprep.subr.bf16.mxu0 %v257_v7  ;;  %235 = vmatprep.subr.bf16.mxu1 %v257_v7 }
  0x36   :  { %117 = vmatpush1.bf16.msra.mxu0 %v259_v8  ;;  %239 = vmatpush1.bf16.msra.mxu1 %v259_v8 }
  0x39   :  { %222 = vmatmul.mubr.msk.bf16.vlgmr.msra.gmra.mrb[0].mxu0 %vm103_vm0, %v260_v9  ;;  %223 = vmatmul.mubr.msk.bf16.vlgmr.msra.gmra.mrb[0].mxu1 %vm103_vm0, %v261_v10 }
 0x10c   :  { %v144_v11 = vpop.f32.mrb[0].mxu0  ;;  %v154_v12 = vpop.f32.mrb[0].mxu1 }
 0x10d   :  { %v146_v13 = vpop.f32.mrb[1].mxu0  ;;  %v156_v15 = vpop.f32.mrb[1].mxu1 }
 0x10e   :  { %v228_v16 = vpack.c.bf16 %v146_v13, %v144_v11  ;;  %v230_v17 = vpack.c.bf16 %v156_v15, %v154_v12  ;;  %v148_v18 = vpop.f32.mrb[2].mxu0  ;;  %v158_v19 = vpop.f32.mrb[2].mxu1 }
 0x10f   :  { %v150_v20 = vpop.f32.mrb[3].mxu0  ;;  %v160_v21 = vpop.f32.mrb[3].mxu1 }
 0x110   :  { %190 = vst.msk [vmem:[#allocation7] sm:$0xff] %vm384_vm3, %v228_v16  ;;  %192 = vst.msk [vmem:[#allocation7 + $0x10] sm:$0xff] %vm384_vm3, %v230_v17  ;;  %v229_v22 = vpack.c.bf16 %v150_v20, %v148_v18  ;;  %v231_v23 = vpack.c.bf16 %v160_v21, %v158_v19 }
 0x112   :  { %191 = vst.msk [vmem:[#allocation7 + $0x8] sm:$0xff] %vm384_vm3, %v229_v22  ;;  %193 = vst.msk [vmem:[#allocation7 + $0x18] sm:$0xff] %vm384_vm3, %v231_v23 }
 0x113   :  { %317 = shalt.err (!%p314_p6)
}
 0x114   :  { %s318_s12 = scalar_lea.hbm %s413_s2, 512 }
 0x115   :  { %p319_p7 = scmp.ne.s32.totalorder %s413_s2, %s318_s12  ;;  %p322_p8 = scmp.lt.u32.totalorder %s318_s12, %s413_s2 }
 0x117   :  { %p324_p9 = pnand %p322_p8, %p319_p7 }
 0x119   :  { %327 = shalt.err (!%p324_p9)
}
 0x11a   :  { %205 = dma.vmem_to_hbm [thread:$0]  %s200_s8, 512, %s413_s2, [#allocation4], %s338_s0, %s338_s0, %s339_s5  }
 0x11b   :  { %332 = dma.done.wait [#allocation4], 512  }
 0x11c   :  { %333 = vsyncadd [#allocation4], 4294966784 }
 0x11d   :  { %209 = vsyncpa [#allocation3], 1 }
 0x11e   :  { %210 = vsyncpa [#allocation6], 1 }
 0x11f   :  { %211 = vsyncpa [#allocation4], 1 }

</bundles_post_ra>
